<compile_context>
chip_gen: v6e
topology: v6e:2x2x1
jax: 0.10.0
libtpu: 0.0.40
codegen_flags: <defaults>
</compile_context>

<pallas_src>
import jax
import jax.numpy as jnp
from jax.experimental import pallas as pl
from jax.experimental.pallas import tpu as pltpu

_LANE = 128                              # full-width unmasked vector stores.
_TARGET_BLOCK_BYTES = 4 * 1024 * 1024    # ~4 MiB/block; 16 MiB with in+out double buffers.
_VMEM_LIMIT_BYTES = 32 * 1024 * 1024     # safe on v5e/v6e/v7x, gives pipelining headroom.


def _identity_kernel(x_ref, o_ref):
    # Hot path: single whole-tile VMEM load + lane-dense unmasked store.
    o_ref[...] = x_ref[...]


def _round_up(n, m):
    return -(-n // m) * m


def _tiled_identity(x2d):
    """Pipelined (block_rows x 128) identity copy over a lane-dense slab."""
    rows, lane = x2d.shape
    itemsize = x2d.dtype.itemsize

    if rows <= 8:
        # Tiny slab: one block covering the full array (allowed: block == array dims).
        block_rows = rows
    else:
        # Cap block bytes, keep block_rows a multiple of 8 (sublane count).
        cap = max(8, (_TARGET_BLOCK_BYTES // (lane * itemsize)) // 8 * 8)
        # Force >= 2 grid steps so v7x's second TensorCore gets work.
        half = max(8, _round_up(-(-rows // 2), 8))
        block_rows = min(cap, half)

    grid = pl.cdiv(rows, block_rows)  # partial last block is masked by Pallas.
    total_bytes = rows * lane * itemsize

    return pl.pallas_call(
        _identity_kernel,
        out_shape=jax.ShapeDtypeStruct(x2d.shape, x2d.dtype),
        grid_spec=pltpu.PrefetchScalarGridSpec(
            num_scalar_prefetch=0,
            grid=(grid,),
            in_specs=[pl.BlockSpec((block_rows, lane), lambda i: (i, 0))],
            out_specs=pl.BlockSpec((block_rows, lane), lambda i: (i, 0)),
        ),
        compiler_params=pltpu.CompilerParams(
            dimension_semantics=("parallel",),
            vmem_limit_bytes=_VMEM_LIMIT_BYTES,
        ),
        cost_estimate=pl.CostEstimate(
            flops=0, transcendentals=0, bytes_accessed=2 * total_bytes
        ),
    )(x2d)


@jax.jit
def bumper_detector_forward(x):
    """Pallas equivalent of BumperDetector.forward().

    x: [N, C, H, W] (NCHW, matching the PyTorch convention).
    Returns x unchanged (the module's forward performs no computation).
    The reshapes below are free bitcasts under this jit; only the Pallas copy
    touches HBM.
    """
    orig_shape = x.shape
    total = x.size

    if total == 0 or total % _LANE != 0:
        # TODO(synk): forward() is empty in the source module; non-lane-aligned
        # sizes simply pass through (identity) without a Pallas call.
        return x

    rows = total // _LANE
    x2d = x.reshape(rows, _LANE)
    y2d = _tiled_identity(x2d)
    return y2d.reshape(orig_shape)


if __name__ == "__main__":
    key = jax.random.PRNGKey(0)
    # Small, module-consistent synthetic input (NCHW).
    x = jax.random.normal(key, (2, 4, 16, 16), dtype=jnp.float32)

    y = bumper_detector_forward(x)
    jax.block_until_ready(y)

    # Sanity check: forward has no compute, so output must equal input exactly.
    assert y.shape == x.shape
    assert bool(jnp.array_equal(y, x))

    print("KERNEL_OK")
</pallas_src>

<mosaic_0001>
module attributes {stable_mosaic.version = 11 : i64} {
  func.func @_identity_kernel(%arg0: i32, %arg1: memref<8x128xf32, #tpu.memory_space<vmem>>, %arg2: memref<8x128xf32, #tpu.memory_space<vmem>>) attributes {dimension_semantics = [#tpu.dimension_semantics<parallel>], iteration_bounds = array<i64: 2>, scalar_prefetch = 0 : i64, scratch_operands = 0 : i64, tpu.core_type = #tpu.core_type<tc>, window_params = [{transform_indices = @transform_0, window_bounds = array<i64: 8, 128>}, {transform_indices = @transform_1, window_bounds = array<i64: 8, 128>}]} {
    %c0 = arith.constant 0 : index
    %c0_0 = arith.constant 0 : index
    %0 = vector.load %arg1[%c0, %c0_0] : memref<8x128xf32, #tpu.memory_space<vmem>>, vector<8x128xf32>
    %c0_1 = arith.constant 0 : index
    %c0_2 = arith.constant 0 : index
    %1 = vector.load %arg2[%c0_1, %c0_2] : memref<8x128xf32, #tpu.memory_space<vmem>>, vector<8x128xf32>
    tpu.vector_store %arg2[%c0_1, %c0_2], %0 {strides = array<i32>} : memref<8x128xf32, #tpu.memory_space<vmem>>, vector<8x128xf32>,
    return
  }
  func.func @transform_0(%arg0: i32) -> (i32, i32) {
    %c0_i32 = arith.constant 0 : i32
    %c0_i32_0 = arith.constant 0 : i32
    return %arg0, %c0_i32 : i32, i32
  }
  func.func @transform_1(%arg0: i32) -> (i32, i32) {
    %c0_i32 = arith.constant 0 : i32
    %c0_i32_0 = arith.constant 0 : i32
    return %arg0, %c0_i32 : i32, i32
  }
}

</mosaic_0001>

<bundles_post_ra>
// kernel: bumper_detector_forward.1
= control target key start
LH: loop header
LB: loop body
LE: loop exit
PB: predicated region body
PF: predicated region fallthrough
CT: control target
= control target key end

     0   :  { %s188_s6 = smov 0   ;;  %s208_s0 = inlined_call_operand.vmem [shape: f32[16,128], index: 0, kind: input, shape index: {}]   ;;  %s209_s1 = inlined_call_operand.vmem [shape: f32[16,128], index: 1, kind: output, shape index: {}]  }
   0x1 LB: > { %s167_s7 = sadd.s32 4294967295, %s190_s6   ;;  %p171_p0 = scmp.ge.s32.totalorder %s190_s6, 1  ;;  %s190_s6 = sphi %s188_s6, %s11_s6  }
   0x2   : > { %p86_p1 = scmp.lt.s32.totalorder %s190_s6, 3 }
   0x4   : > { %p87_p2 = pnand %p171_p0, %p86_p1 }
   0x5   : > { %p104_p3 = scmp.lt.s32.totalorder (!%p87_p2), %s167_s7, 1 }
   0x6   : > { %90 = sbr.rel (%p87_p2) target bundleno = 16 (0x10), region = 24 }
   0xb   : > { %s211_s7 = smov (!%p104_p3, %s167_s7), 1 }
   0xc   : > { %s172_s8 = sshll.u32 %s211_s7, 3 }
   0xd   : > { %s107_s11 = scalar_lea.vmem %s208_s0, %s172_s8  ;;  %s111_s14 = scalar_lea.vmem %s209_s1, %s172_s8 }
   0xe   : > { %v112_v0 = vld [vmem:[%s107_s11] sm:$0xff] }
   0xf   : > { %113 = vst [vmem:[%s111_s14] sm:$0xff] %v112_v0 }
  0x10 PF: > { %s11_s6 = sadd.s32 1, %s190_s6  }
  0x11   : > { %p8_p4 = scmp.ge.s32.totalorder %s11_s6, 4  }
  0x13   :  { %10 = sbr.rel (!%p8_p4) target bundleno = 1 (0x1), region = 54 }

</bundles_post_ra>
